<compile_context>
chip_gen: v7x
topology: tpu7x:2x2x1
jax: 0.10.0
libtpu: 0.0.40
codegen_flags: <defaults>
</compile_context>

<pallas_src>
import math

import jax
import jax.numpy as jnp
import numpy as np
from jax.experimental import pallas as pl
from jax.experimental.pallas import tpu as pltpu


# --------------------------------------------------------------------------
# Kernel body: one lane-dense tile of x plus the (broadcast) pe tile.
# --------------------------------------------------------------------------
def _pe_add_kernel(x_ref, pe_ref, o_ref):
    # x_ref: (tb, tc) or (tb, tl, D); pe_ref: (1, tc) or (1, tl, D).
    o_ref[...] = x_ref[...] + pe_ref[...]


# --------------------------------------------------------------------------
# PE table (same buffer the PyTorch __init__ builds).
# --------------------------------------------------------------------------
def make_pe_table(d, max_len=512, dtype=jnp.float32):
    pos = jnp.arange(max_len, dtype=jnp.float32)[:, None]            # (max_len, 1)
    div = jnp.exp(jnp.arange(0, d, 2, dtype=jnp.float32)
                  * (-math.log(10000.0) / d))                        # (d//2,)
    ang = pos * div                                                   # (max_len, d//2)
    pe = jnp.zeros((max_len, d), jnp.float32)
    pe = pe.at[:, 0::2].set(jnp.sin(ang))
    pe = pe.at[:, 1::2].set(jnp.cos(ang))
    return pe.astype(dtype)


# --------------------------------------------------------------------------
# Hardware-aware configuration.
# --------------------------------------------------------------------------
def _hw_config():
    """Returns (max_block_bytes, vmem_limit_bytes, two_tensorcores)."""
    kind = ""
    try:
        kind = jax.devices()[0].device_kind.lower()
    except Exception:
        pass
    two_tc = "v7" in kind  # v5e/v6e: 1 TensorCore per chip; v7x: 2.

    vmem_cap = None
    try:
        vmem_cap = int(pltpu.get_tpu_info().vmem_capacity_bytes)
    except Exception:
        pass
    if vmem_cap is None:
        vmem_cap = (64 << 20) if two_tc else (128 << 20)

    if vmem_cap <= (64 << 20):
        # v7x-class: 64 MiB physical -> keep the double-buffered working set
        # (2x x-block + 2x out-block + pe block) well under ~48 MiB.
        return 6 << 20, 48 << 20, two_tc
    # v5e / v6e class: 128 MiB physical -> bigger blocks, fewer grid steps.
    return 12 << 20, 80 << 20, two_tc


def _round_down(x, m):
    return (x // m) * m


def _sublane_multiple(itemsize):
    # f32 -> 8, bf16 -> 16, int8/fp8 -> 32 (sub-32-bit dtypes pack sublanes).
    return max(8, 32 // max(1, itemsize))


# --------------------------------------------------------------------------
# Tile selection.
# --------------------------------------------------------------------------
def _select_tiles_2d(B, N, itemsize, max_block_bytes, two_tc):
    """Tiles for the flattened (B, N=L*D) layout: batch on sublanes, N on lanes."""
    sub = _sublane_multiple(itemsize)
    row_bytes = N * itemsize

    fit_rows = max(1, max_block_bytes // max(1, row_bytes))
    if fit_rows >= B:
        tb = B                                  # full batch (== array dim: legal)
    elif fit_rows >= sub:
        tb = _round_down(fit_rows, sub)         # multiple of the sublane tile
    else:
        tb = B if B <= sub else sub             # rows too big -> tile lanes below

    if tb * row_bytes <= max_block_bytes or N <= 128:
        tc = N
    else:
        tc = min(N, max(128, _round_down(max_block_bytes // (tb * itemsize), 128)))

    if two_tc:
        nb, nc = pl.cdiv(B, tb), pl.cdiv(N, tc)
        total = nb * nc
        if total == 1:
            # Give the second TensorCore something to do when it's cheap.
            if B >= 2 * sub:
                tb = _round_down(pl.cdiv(B, 2), sub)
            elif N >= 256:
                tc = max(128, _round_down(pl.cdiv(N, 2), 128))
        elif total % 2 == 1 and tb > sub:
            # Nudge the step count to an even number (bounded search).
            for cand in range(tb - sub, sub - 1, -sub):
                if (pl.cdiv(B, cand) * nc) % 2 == 0:
                    tb = cand
                    break
                if tb - cand >= 8 * sub:
                    break
    return tb, tc


def _select_tiles_3d(B, L, D, itemsize, max_block_bytes, two_tc):
    """Tiles for the lane-aligned (B, L, D) layout: L on sublanes, D on lanes."""
    sub = _sublane_multiple(itemsize)
    row_bytes = L * D * itemsize
    if row_bytes <= max_block_bytes:
        tl = L
        tb = min(B, max(1, max_block_bytes // row_bytes))
    else:
        # Single (L, D) slab exceeds the block budget -> tile the sequence axis.
        tb = 1
        tl = min(L, max(sub, _round_down(max_block_bytes // (D * itemsize), sub)))

    if two_tc:
        nb, nl = pl.cdiv(B, tb), pl.cdiv(L, tl)
        total = nb * nl
        if total == 1 and B >= 2:
            tb = pl.cdiv(B, 2)                  # leading dim: no sublane constraint
        elif total % 2 == 1 and tb > 1:
            for cand in range(tb - 1, 0, -1):
                if (pl.cdiv(B, cand) * nl) % 2 == 0:
                    tb = cand
                    break
                if tb - cand >= 8:
                    break
    return tb, tl


# --------------------------------------------------------------------------
# pallas_call builder.
# --------------------------------------------------------------------------
def _pallas_add(x_in, pe_in, x_block, pe_block, grid, vmem_limit, pe_is_resident):
    ndim = len(x_block)
    if ndim == 2:
        x_map = lambda i, j: (i, j)
        pe_map = lambda i, j: (0, j)
    else:
        x_map = lambda i, j: (i, j, 0)
        pe_map = lambda i, j: (0, j, 0)

    def build(pe_single_buffer):
        pe_kwargs = {"pipeline_mode": pl.Buffered(1)} if pe_single_buffer else {}
        return pl.pallas_call(
            _pe_add_kernel,
            out_shape=jax.ShapeDtypeStruct(x_in.shape, x_in.dtype),
            grid_spec=pltpu.PrefetchScalarGridSpec(
                num_scalar_prefetch=0,
                grid=grid,
                in_specs=[
                    pl.BlockSpec(x_block, x_map),
                    pl.BlockSpec(pe_block, pe_map, **pe_kwargs),
                ],
                out_specs=pl.BlockSpec(x_block, x_map),
            ),
            compiler_params=pltpu.CompilerParams(
                dimension_semantics=("parallel", "parallel"),
                vmem_limit_bytes=vmem_limit,
            ),
        )

    if pe_is_resident:
        try:
            return build(True)(x_in, pe_in)
        except Exception:
            # pl.Buffered(1) on the grid-invariant pe block is an optimization
            # only; fall back to the default double-buffered spec if rejected.
            return build(False)(x_in, pe_in)
    return build(False)(x_in, pe_in)


# --------------------------------------------------------------------------
# Forward.
# --------------------------------------------------------------------------
def positional_encoding_forward(x, pe):
    """x: (B, L, D), pe: (max_len, D)  ->  x + pe[None, :L]  (B, L, D)."""
    B, L, D = x.shape
    max_block_bytes, vmem_limit, two_tc = _hw_config()
    itemsize = jnp.dtype(x.dtype).itemsize
    pe_l = pe[:L].astype(x.dtype)                                   # (L, D)

    if D % 128 == 0:
        # Already lane dense: keep the 3-D layout (batch on the leading axis,
        # L on sublanes, D on lanes).
        tb, tl = _select_tiles_3d(B, L, D, itemsize, max_block_bytes, two_tc)
        grid = (pl.cdiv(B, tb), pl.cdiv(L, tl))
        return _pallas_add(
            x, pe_l[None], (tb, tl, D), (1, tl, D), grid, vmem_limit,
            pe_is_resident=(grid[1] == 1))

    # D not a multiple of 128: collapse (L, D) onto the lane axis so every
    # load/store is a dense 128-lane vreg row instead of masked partials.
    N = L * D
    x2 = x.reshape(B, N)
    pe2 = pe_l.reshape(1, N)
    tb, tc = _select_tiles_2d(B, N, itemsize, max_block_bytes, two_tc)
    grid = (pl.cdiv(B, tb), pl.cdiv(N, tc))
    out2 = _pallas_add(
        x2, pe2, (tb, tc), (1, tc), grid, vmem_limit,
        pe_is_resident=(grid[1] == 1))
    return out2.reshape(B, L, D)


def positional_encoding_reference(x, pe):
    """Pure-JAX replica of the PyTorch forward (for verification)."""
    L = x.shape[1]
    return x + pe[None, :L].astype(x.dtype)


if __name__ == "__main__":
    B, L, D = 2, 8, 32
    MAX_LEN = 512

    pe = make_pe_table(D, max_len=MAX_LEN)

    key = jax.random.PRNGKey(0)
    x = jax.random.normal(key, (B, L, D), dtype=jnp.float32)

    out = positional_encoding_forward(x, pe)
    out = jax.block_until_ready(out)

    ref = positional_encoding_reference(x, pe)
    np.testing.assert_allclose(np.asarray(out), np.asarray(ref),
                               rtol=1e-6, atol=1e-6)
    assert out.shape == (B, L, D)
    print("KERNEL_OK")
</pallas_src>

<mosaic_0001>
module attributes {stable_mosaic.version = 11 : i64} {
  func.func @_pe_add_kernel(%arg0: i32, %arg1: i32, %arg2: memref<2x256xf32, #tpu.memory_space<vmem>>, %arg3: memref<1x256xf32, #tpu.memory_space<vmem>>, %arg4: memref<2x256xf32, #tpu.memory_space<vmem>>) attributes {dimension_semantics = [#tpu.dimension_semantics<parallel>, #tpu.dimension_semantics<parallel>], iteration_bounds = array<i64: 1, 1>, scalar_prefetch = 0 : i64, scratch_operands = 0 : i64, tpu.core_type = #tpu.core_type<tc>, window_params = [{transform_indices = @transform_0, window_bounds = array<i64: 2, 256>}, {pipeline_mode = #tpu.pipeline_mode<synchronous>, transform_indices = @transform_1, window_bounds = array<i64: 1, 256>}, {transform_indices = @transform_2, window_bounds = array<i64: 2, 256>}]} {
    %c0 = arith.constant 0 : index
    %c0_0 = arith.constant 0 : index
    %0 = vector.load %arg2[%c0, %c0_0] : memref<2x256xf32, #tpu.memory_space<vmem>>, vector<2x256xf32>
    %c0_1 = arith.constant 0 : index
    %c0_2 = arith.constant 0 : index
    %1 = vector.load %arg3[%c0_1, %c0_2] : memref<1x256xf32, #tpu.memory_space<vmem>>, vector<1x256xf32>
    %2 = vector.broadcast %1 : vector<1x256xf32> to vector<2x256xf32>
    %3 = arith.addf %0, %2 : vector<2x256xf32>
    %c0_3 = arith.constant 0 : index
    %c0_4 = arith.constant 0 : index
    %4 = vector.load %arg4[%c0_3, %c0_4] : memref<2x256xf32, #tpu.memory_space<vmem>>, vector<2x256xf32>
    tpu.vector_store %arg4[%c0_3, %c0_4], %3 {strides = array<i32>} : memref<2x256xf32, #tpu.memory_space<vmem>>, vector<2x256xf32>,
    return
  }
  func.func @transform_0(%arg0: i32, %arg1: i32) -> (i32, i32) {
    %c0_i32 = arith.constant 0 : i32
    return %arg0, %arg1 : i32, i32
  }
  func.func @transform_1(%arg0: i32, %arg1: i32) -> (i32, i32) {
    %c0_i32 = arith.constant 0 : i32
    %c0_i32_0 = arith.constant 0 : i32
    return %c0_i32, %arg1 : i32, i32
  }
  func.func @transform_2(%arg0: i32, %arg1: i32) -> (i32, i32) {
    %c0_i32 = arith.constant 0 : i32
    return %arg0, %arg1 : i32, i32
  }
}

module attributes {stable_mosaic.version = 11 : i64} {
  func.func @_pe_add_kernel(%arg0: i32, %arg1: i32, %arg2: memref<2x256xf32, #tpu.memory_space<vmem>>, %arg3: memref<1x256xf32, #tpu.memory_space<vmem>>, %arg4: memref<2x256xf32, #tpu.memory_space<vmem>>) attributes {dimension_semantics = [#tpu.dimension_semantics<parallel>, #tpu.dimension_semantics<parallel>], iteration_bounds = array<i64: 1, 1>, scalar_prefetch = 0 : i64, scratch_operands = 0 : i64, tpu.core_type = #tpu.core_type<tc>, window_params = [{transform_indices = @transform_0, window_bounds = array<i64: 2, 256>}, {transform_indices = @transform_1, window_bounds = array<i64: 1, 256>}, {transform_indices = @transform_2, window_bounds = array<i64: 2, 256>}]} {
    %c0 = arith.constant 0 : index
    %c0_0 = arith.constant 0 : index
    %0 = vector.load %arg2[%c0, %c0_0] : memref<2x256xf32, #tpu.memory_space<vmem>>, vector<2x256xf32>
    %c0_1 = arith.constant 0 : index
    %c0_2 = arith.constant 0 : index
    %1 = vector.load %arg3[%c0_1, %c0_2] : memref<1x256xf32, #tpu.memory_space<vmem>>, vector<1x256xf32>
    %2 = vector.broadcast %1 : vector<1x256xf32> to vector<2x256xf32>
    %3 = arith.addf %0, %2 : vector<2x256xf32>
    %c0_3 = arith.constant 0 : index
    %c0_4 = arith.constant 0 : index
    %4 = vector.load %arg4[%c0_3, %c0_4] : memref<2x256xf32, #tpu.memory_space<vmem>>, vector<2x256xf32>
    tpu.vector_store %arg4[%c0_3, %c0_4], %3 {strides = array<i32>} : memref<2x256xf32, #tpu.memory_space<vmem>>, vector<2x256xf32>,
    return
  }
  func.func @transform_0(%arg0: i32, %arg1: i32) -> (i32, i32) {
    %c0_i32 = arith.constant 0 : i32
    return %arg0, %arg1 : i32, i32
  }
  func.func @transform_1(%arg0: i32, %arg1: i32) -> (i32, i32) {
    %c0_i32 = arith.constant 0 : i32
    %c0_i32_0 = arith.constant 0 : i32
    return %c0_i32, %arg1 : i32, i32
  }
  func.func @transform_2(%arg0: i32, %arg1: i32) -> (i32, i32) {
    %c0_i32 = arith.constant 0 : i32
    return %arg0, %arg1 : i32, i32
  }
}

</mosaic_0001>

<bundles_post_ra>
// kernel: tpu_custom_call.1
= control target key start
LH: loop header
LB: loop body
LE: loop exit
PB: predicated region body
PF: predicated region fallthrough
CT: control target
= control target key end

     0   :  { %7 = vsyncpa [#allocation3], 0  ;;  %s205_s0 = inlined_call_operand.hbm [shape: f32[2,256], index: 0, kind: input, shape index: {}]   ;;  %s206_s1 = inlined_call_operand.hbm [shape: f32[1,256], index: 1, kind: input, shape index: {}]   ;;  %s207_s2 = inlined_call_operand.hbm [shape: f32[2,256], index: 2, kind: output, shape index: {}]  }
   0x1   :  { %8 = vsyncpa [#allocation6], 0 }
   0x2   :  { %9 = vsyncpa [#allocation4], 0  ;;  %s150_s9 = smov [#allocation2]   ;;  %s151_s11 = smov [#allocation5]  }
   0x3   :  { %s16_s10 = sshll.u32 %s150_s9, 4  ;;  %s26_s12 = sshll.u32 %s151_s11, 4  ;;  %s17_s10 = int_to_ptr.vmem [resolvable:$true] %s16_s10  ;;  %s27_s12 = int_to_ptr.vmem [resolvable:$true] %s26_s12 }
   0x4   :  { %s78_s15 = scalar_lea.hbm %s205_s0, 64 }
   0x5   :  { %p79_p0 = scmp.ne.s32.totalorder %s205_s0, %s78_s15  ;;  %p82_p1 = scmp.lt.u32.totalorder %s78_s15, %s205_s0 }
   0x7   :  { %p84_p2 = pnand %p82_p1, %p79_p0 }
   0x9   :  { %87 = shalt.err (!%p84_p2)
}
   0xa   :  { %s88_s20 = scalar_lea.vmem %s17_s10, 64  ;;  %p93_p4 = scmp.lt.s32.totalorder %s17_s10, %s17_s10 }
   0xb   :  { %p89_p3 = scmp.ne.s32.totalorder %s17_s10, %s88_s20  ;;  %p94_p5 = scmp.lt.s32.totalorder %s88_s20, %s88_s20 }
   0xd   :  { %p95_p6 = por %p94_p5, %p93_p4 }
   0xf   :  { %p96_p7 = pnand %p95_p6, %p89_p3 }
  0x11   :  { %99 = shalt.err (!%p96_p7)
}
  0x12   :  { %19 = dma.hbm_to_vmem [thread:$0]  %s205_s0, 64, %s17_s10, [#allocation3]  }
  0x13   :  { %s100_s25 = scalar_lea.hbm %s206_s1, 32 }
  0x14   :  { %p101_p8 = scmp.ne.s32.totalorder %s206_s1, %s100_s25  ;;  %p104_p9 = scmp.lt.u32.totalorder %s100_s25, %s206_s1 }
  0x16   :  { %p106_p10 = pnand %p104_p9, %p101_p8 }
  0x18   :  { %109 = shalt.err (!%p106_p10)
}
  0x19   :  { %s110_s30 = scalar_lea.vmem %s27_s12, 32  ;;  %p115_p12 = scmp.lt.s32.totalorder %s27_s12, %s27_s12 }
  0x1a   :  { %p111_p11 = scmp.ne.s32.totalorder %s27_s12, %s110_s30  ;;  %p116_p13 = scmp.lt.s32.totalorder %s110_s30, %s110_s30 }
  0x1c   :  { %p117_p0 = por %p116_p13, %p115_p12 }
  0x1e   :  { %p118_p1 = pnand %p117_p0, %p111_p11 }
  0x20   :  { %121 = shalt.err (!%p118_p1)
}
  0x21   :  { %29 = dma.hbm_to_vmem [thread:$0]  %s206_s1, 32, %s27_s12, [#allocation6]  }
  0x22   :  { %144 = dma.done.wait [#allocation3], 64  }
  0x23   :  { %145 = vsyncadd [#allocation3], 4294967232 }
  0x24   :  { %146 = dma.done.wait [#allocation6], 32  }
  0x25   :  { %147 = vsyncadd [#allocation6], 4294967264  ;;  %v39_v0 = vlaneseq  ;;  %v152_v1 = vmov 1983009808   ;;  %v37_v7 = vld [vmem:[#allocation5] sm:$0x3] }
  0x26   :  { %v49_v2 = vunpack.c.l.s4 %v152_v1  ;;  %v36_v12 = vld [vmem:[#allocation2] sm:$0xf]  ;;  %s153_s4 = smov [#allocation7]  }
  0x27   :  { %v40_v3 = vshrl.u32 %v39_v0, 7  ;;  %s64_s5 = sshll.u32 %s153_s4, 4  ;;  %s65_s5 = int_to_ptr.vmem [resolvable:$true] %s64_s5 }
  0x28   :  { %v50_v6 = vunpack.c.0.s8 %v49_v2  ;;  %s122_s1 = scalar_lea.vmem %s65_s5, 64  ;;  %p127_p3 = scmp.lt.s32.totalorder %s65_s5, %s65_s5 }
  0x29   :  { %v41_v4 = vsub.s32 0, %v40_v3  ;;  %v45_v5 = vsub.s32 1, %v40_v3  ;;  %p123_p2 = scmp.ne.s32.totalorder %s65_s5, %s122_s1  ;;  %p128_p4 = scmp.lt.s32.totalorder %s122_s1, %s122_s1 }
  0x2a   :  { %v53_v10 = vsub.s32 %v50_v6, %v40_v3 }
  0x2b   :  { %v42_v8 = vrot.slane %v37_v7, %v41_v4  ;;  %v46_v9 = vrot.slane %v37_v7, %v45_v5  ;;  %p129_p5 = por %p128_p4, %p127_p3 }
  0x2d   :  { %v47_v11 = vcombine.low %v42_v8, %v46_v9  ;;  %p130_p6 = pnand %p129_p5, %p123_p2 }
  0x2f   :  { %v54_v13 = vrot.slane %v47_v11, %v53_v10 }
  0x31   :  { %v56_v14 = vadd.f32 %v54_v13, %v36_v12 }
  0x33   :  { %57 = vst [vmem:[#allocation7] sm:$0xf] %v56_v14 }
  0x34   :  { %133 = shalt.err (!%p130_p6)
}
  0x35   :  { %s134_s8 = scalar_lea.hbm %s207_s2, 64 }
  0x36   :  { %p135_p7 = scmp.ne.s32.totalorder %s207_s2, %s134_s8  ;;  %p138_p8 = scmp.lt.u32.totalorder %s134_s8, %s207_s2 }
  0x38   :  { %p140_p9 = pnand %p138_p8, %p135_p7 }
  0x3a   :  { %143 = shalt.err (!%p140_p9)
}
  0x3b   :  { %67 = dma.vmem_to_hbm [thread:$0]  %s65_s5, 64, %s207_s2, [#allocation4]  }
  0x3c   :  { %148 = dma.done.wait [#allocation4], 64  }
  0x3d   :  { %149 = vsyncadd [#allocation4], 4294967232 }
  0x3e   :  { %71 = vsyncpa [#allocation3], 1 }
  0x3f   :  { %72 = vsyncpa [#allocation6], 1 }
  0x40   :  { %73 = vsyncpa [#allocation4], 1 }

// kernel: tpu_custom_call.1
= control target key start
LH: loop header
LB: loop body
LE: loop exit
PB: predicated region body
PF: predicated region fallthrough
CT: control target
= control target key end

     0   :  { %7 = vsyncpa [#allocation3], 0  ;;  %s205_s0 = inlined_call_operand.hbm [shape: f32[2,256], index: 0, kind: input, shape index: {}]   ;;  %s206_s1 = inlined_call_operand.hbm [shape: f32[1,256], index: 1, kind: input, shape index: {}]   ;;  %s207_s2 = inlined_call_operand.hbm [shape: f32[2,256], index: 2, kind: output, shape index: {}]  }
   0x1   :  { %8 = vsyncpa [#allocation6], 0 }
   0x2   :  { %9 = vsyncpa [#allocation4], 0  ;;  %s150_s9 = smov [#allocation2]   ;;  %s151_s11 = smov [#allocation5]  }
   0x3   :  { %s16_s10 = sshll.u32 %s150_s9, 4  ;;  %s26_s12 = sshll.u32 %s151_s11, 4  ;;  %s17_s10 = int_to_ptr.vmem [resolvable:$true] %s16_s10  ;;  %s27_s12 = int_to_ptr.vmem [resolvable:$true] %s26_s12 }
   0x4   :  { %s78_s15 = scalar_lea.hbm %s205_s0, 64 }
   0x5   :  { %p79_p0 = scmp.ne.s32.totalorder %s205_s0, %s78_s15  ;;  %p82_p1 = scmp.lt.u32.totalorder %s78_s15, %s205_s0 }
   0x7   :  { %p84_p2 = pnand %p82_p1, %p79_p0 }
   0x9   :  { %87 = shalt.err (!%p84_p2)
}
   0xa   :  { %s88_s20 = scalar_lea.vmem %s17_s10, 64  ;;  %p93_p4 = scmp.lt.s32.totalorder %s17_s10, %s17_s10 }
   0xb   :  { %p89_p3 = scmp.ne.s32.totalorder %s17_s10, %s88_s20  ;;  %p94_p5 = scmp.lt.s32.totalorder %s88_s20, %s88_s20 }
   0xd   :  { %p95_p6 = por %p94_p5, %p93_p4 }
   0xf   :  { %p96_p7 = pnand %p95_p6, %p89_p3 }
  0x11   :  { %99 = shalt.err (!%p96_p7)
}
  0x12   :  { %19 = dma.hbm_to_vmem [thread:$0]  %s205_s0, 64, %s17_s10, [#allocation3]  }
  0x13   :  { %s100_s25 = scalar_lea.hbm %s206_s1, 32 }
  0x14   :  { %p101_p8 = scmp.ne.s32.totalorder %s206_s1, %s100_s25  ;;  %p104_p9 = scmp.lt.u32.totalorder %s100_s25, %s206_s1 }
  0x16   :  { %p106_p10 = pnand %p104_p9, %p101_p8 }
  0x18   :  { %109 = shalt.err (!%p106_p10)
}
  0x19   :  { %s110_s30 = scalar_lea.vmem %s27_s12, 32  ;;  %p115_p12 = scmp.lt.s32.totalorder %s27_s12, %s27_s12 }
  0x1a   :  { %p111_p11 = scmp.ne.s32.totalorder %s27_s12, %s110_s30  ;;  %p116_p13 = scmp.lt.s32.totalorder %s110_s30, %s110_s30 }
  0x1c   :  { %p117_p0 = por %p116_p13, %p115_p12 }
  0x1e   :  { %p118_p1 = pnand %p117_p0, %p111_p11 }
  0x20   :  { %121 = shalt.err (!%p118_p1)
}
  0x21   :  { %29 = dma.hbm_to_vmem [thread:$0]  %s206_s1, 32, %s27_s12, [#allocation6]  }
  0x22   :  { %144 = dma.done.wait [#allocation3], 64  }
  0x23   :  { %145 = vsyncadd [#allocation3], 4294967232 }
  0x24   :  { %146 = dma.done.wait [#allocation6], 32  }
  0x25   :  { %147 = vsyncadd [#allocation6], 4294967264  ;;  %v39_v0 = vlaneseq  ;;  %v152_v1 = vmov 1983009808   ;;  %v37_v7 = vld [vmem:[#allocation5] sm:$0x3] }
  0x26   :  { %v49_v2 = vunpack.c.l.s4 %v152_v1  ;;  %v36_v12 = vld [vmem:[#allocation2] sm:$0xf]  ;;  %s153_s4 = smov [#allocation7]  }
  0x27   :  { %v40_v3 = vshrl.u32 %v39_v0, 7  ;;  %s64_s5 = sshll.u32 %s153_s4, 4  ;;  %s65_s5 = int_to_ptr.vmem [resolvable:$true] %s64_s5 }
  0x28   :  { %v50_v6 = vunpack.c.0.s8 %v49_v2  ;;  %s122_s1 = scalar_lea.vmem %s65_s5, 64  ;;  %p127_p3 = scmp.lt.s32.totalorder %s65_s5, %s65_s5 }
  0x29   :  { %v41_v4 = vsub.s32 0, %v40_v3  ;;  %v45_v5 = vsub.s32 1, %v40_v3  ;;  %p123_p2 = scmp.ne.s32.totalorder %s65_s5, %s122_s1  ;;  %p128_p4 = scmp.lt.s32.totalorder %s122_s1, %s122_s1 }
  0x2a   :  { %v53_v10 = vsub.s32 %v50_v6, %v40_v3 }
  0x2b   :  { %v42_v8 = vrot.slane %v37_v7, %v41_v4  ;;  %v46_v9 = vrot.slane %v37_v7, %v45_v5  ;;  %p129_p5 = por %p128_p4, %p127_p3 }
  0x2d   :  { %v47_v11 = vcombine.low %v42_v8, %v46_v9  ;;  %p130_p6 = pnand %p129_p5, %p123_p2 }
  0x2f   :  { %v54_v13 = vrot.slane %v47_v11, %v53_v10 }
  0x31   :  { %v56_v14 = vadd.f32 %v54_v13, %v36_v12 }
  0x33   :  { %57 = vst [vmem:[#allocation7] sm:$0xf] %v56_v14 }
  0x34   :  { %133 = shalt.err (!%p130_p6)
}
  0x35   :  { %s134_s8 = scalar_lea.hbm %s207_s2, 64 }
  0x36   :  { %p135_p7 = scmp.ne.s32.totalorder %s207_s2, %s134_s8  ;;  %p138_p8 = scmp.lt.u32.totalorder %s134_s8, %s207_s2 }
  0x38   :  { %p140_p9 = pnand %p138_p8, %p135_p7 }
  0x3a   :  { %143 = shalt.err (!%p140_p9)
}
  0x3b   :  { %67 = dma.vmem_to_hbm [thread:$0]  %s65_s5, 64, %s207_s2, [#allocation4]  }
  0x3c   :  { %148 = dma.done.wait [#allocation4], 64  }
  0x3d   :  { %149 = vsyncadd [#allocation4], 4294967232 }
  0x3e   :  { %71 = vsyncpa [#allocation3], 1 }
  0x3f   :  { %72 = vsyncpa [#allocation6], 1 }
  0x40   :  { %73 = vsyncpa [#allocation4], 1 }

</bundles_post_ra>
